<compile_context>
chip_gen: v6e
topology: v6e:2x2x1
jax: 0.10.0
libtpu: 0.0.40
codegen_flags: <defaults>
</compile_context>

<pallas_src>
import jax
import jax.numpy as jnp
from jax.experimental import pallas as pl
from jax.experimental.pallas import tpu as pltpu


# ----------------------------------------------------------------------------
# VMEM-aware sizing helpers
# ----------------------------------------------------------------------------
def _vmem_limit_and_budget():
    """Scoped-VMEM limit to request and a conservative working-set budget."""
    cap = 64 * 1024 * 1024            # conservative default (v7x: 64 MiB / TC)
    try:
        info = pltpu.get_tpu_info()
        c = getattr(info, "vmem_capacity_bytes", None)
        if c is not None and int(c) > 0:
            cap = int(c)
    except Exception:
        pass
    limit = min(int(cap * 0.8), 100 * 1024 * 1024)
    budget = int(limit * 0.6)          # headroom for double-buffering slop
    return limit, budget


def _pick_gemm_tiles(N, HW, per_lane_bytes, vmem_budget, min_steps=2):
    """Pick (bN, thw): images per block and lane-tile width for the conv GEMMs.

    Prefers >= min_steps total grid steps (v7x TC sharding / pipelining), then the
    largest lane block (DMA efficiency), then fewer steps, under a VMEM budget.
    """
    thw_cands = sorted({d for d in range(128, HW, 128) if HW % d == 0} | {HW})
    bn_cands = [d for d in range(1, N + 1) if N % d == 0]
    feasible = [(bN, thw) for thw in thw_cands for bN in bn_cands
                if bN * thw * per_lane_bytes <= vmem_budget]
    if not feasible:
        return bn_cands[0], thw_cands[0]

    def score(c):
        bN, thw = c
        steps = (N // bN) * (HW // thw)
        return (min(steps, min_steps), min(bN * thw, 2048), -steps)

    return max(feasible, key=score)


def _pick_head_group(BNh, per_g_bytes, budget, min_steps=4):
    """Largest divisor of B*Nh fitting the VMEM budget and keeping >= min_steps."""
    gmax_mem = max(1, budget // max(per_g_bytes, 1))
    gmax_steps = max(1, BNh // min_steps)
    g = 1
    for d in range(1, BNh + 1):
        if BNh % d == 0 and d <= gmax_mem and d <= gmax_steps:
            g = d
    return g


def _pick_flash_tiles(BNh, HW, dkh, dvh, budget, min_steps=2):
    """(head group G, key tile tkv) for the online-softmax attention path."""
    tkv_cands = sorted({d for d in range(128, HW, 128) if HW % d == 0} | {HW})

    def per_g(tkv):
        io = (2 * dkh * HW * 2                  # resident q block (bf16)
              + 2 * 2 * (dkh + dvh) * tkv * 2   # double-buffered k/v blocks
              + 2 * HW * dvh * 2)               # output block (bf16)
        scr = HW * dvh * 4 + 2 * HW * 4         # acc + m/l scratch (f32)
        wrk = 10 * HW * tkv + 4 * HW * dvh      # logits f32 + exp f32 + p bf16 + pv
        return io + scr + wrk

    tkv = tkv_cands[0]
    for t in tkv_cands:
        if per_g(t) <= budget:
            tkv = t
    gmax_mem = max(1, budget // max(per_g(tkv), 1))
    gmax_steps = max(1, BNh // min_steps)
    g = 1
    for d in range(1, BNh + 1):
        if BNh % d == 0 and d <= gmax_mem and d <= gmax_steps:
            g = d
    return g, tkv


# ----------------------------------------------------------------------------
# Fused conv_out + qkv GEMM (shared im2col read, dual-dtype outputs)
# ----------------------------------------------------------------------------
def _make_fused_conv_kernel(bN):
    def kernel(p_ref, wc_ref, wq_ref, bc_ref, bq_ref, oc_ref, oq_ref):
        # p: (bN, K, thw) bf16; wc: (Cc, K) bf16; wq: (Cq, K) bf16
        # oc: (bN, Cc, thw) f32; oq: (bN, Cq, thw) bf16  (HW lane-dense everywhere)
        for b in range(bN):                       # static unroll
            pb = p_ref[b]
            oc_ref[b] = (jnp.dot(wc_ref[...], pb,
                                 preferred_element_type=jnp.float32)
                         + bc_ref[...])
            oq_ref[b] = (jnp.dot(wq_ref[...], pb,
                                 preferred_element_type=jnp.float32)
                         + bq_ref[...]).astype(jnp.bfloat16)
    return kernel


def fused_conv_gemm(patches, w_conv, w_qkv, b_conv, b_qkv):
    """patches: (N, K, HW) bf16 -> (conv (N,Cc,HW) f32, qkv (N,Cq,HW) bf16)."""
    N, K, HW = patches.shape
    Cc = w_conv.shape[0]
    Cq = w_qkv.shape[0]
    vmem_limit, budget = _vmem_limit_and_budget()
    fixed = 2 * (Cc + Cq) * K * 2 + (Cc + Cq) * 8
    per_lane = 2 * K * 2 + 2 * Cc * 4 + 2 * Cq * 2     # 2x-buffered in + both outs
    bN, thw = _pick_gemm_tiles(N, HW, per_lane, max(budget - fixed, 1))

    return pl.pallas_call(
        _make_fused_conv_kernel(bN),
        out_shape=(jax.ShapeDtypeStruct((N, Cc, HW), jnp.float32),
                   jax.ShapeDtypeStruct((N, Cq, HW), jnp.bfloat16)),
        grid_spec=pltpu.PrefetchScalarGridSpec(
            num_scalar_prefetch=0,
            grid=(N // bN, HW // thw),
            in_specs=[
                pl.BlockSpec((bN, K, thw), lambda n, j: (n, 0, j)),
                pl.BlockSpec((Cc, K), lambda n, j: (0, 0)),    # resident weights
                pl.BlockSpec((Cq, K), lambda n, j: (0, 0)),
                pl.BlockSpec((Cc, 1), lambda n, j: (0, 0)),
                pl.BlockSpec((Cq, 1), lambda n, j: (0, 0)),
            ],
            out_specs=[
                pl.BlockSpec((bN, Cc, thw), lambda n, j: (n, 0, j)),
                pl.BlockSpec((bN, Cq, thw), lambda n, j: (n, 0, j)),
            ],
        ),
        compiler_params=pltpu.CompilerParams(
            dimension_semantics=("parallel", "parallel"),
            vmem_limit_bytes=vmem_limit),
    )(patches, w_conv, w_qkv,
      b_conv.reshape(Cc, 1).astype(jnp.float32),
      b_qkv.reshape(Cq, 1).astype(jnp.float32))


# ----------------------------------------------------------------------------
# Plain GEMM + bias (used for the 1x1 attn_out conv; no im2col needed)
# ----------------------------------------------------------------------------
def _make_gemm_bias_kernel(bN):
    def kernel(x_ref, w_ref, b_ref, o_ref):
        for b in range(bN):
            o_ref[b] = (jnp.dot(w_ref[...], x_ref[b],
                                preferred_element_type=jnp.float32)
                        + b_ref[...])
    return kernel


def gemm_bias(x, w, bias):
    """x: (N, Cin, HW) bf16; w: (Cout, Cin) bf16; bias: (Cout,) -> (N, Cout, HW) f32."""
    N, Cin, HW = x.shape
    Cout = w.shape[0]
    vmem_limit, budget = _vmem_limit_and_budget()
    per_lane = 2 * Cin * 2 + 2 * Cout * 4
    bN, thw = _pick_gemm_tiles(N, HW, per_lane, budget)

    return pl.pallas_call(
        _make_gemm_bias_kernel(bN),
        out_shape=jax.ShapeDtypeStruct((N, Cout, HW), jnp.float32),
        grid_spec=pltpu.PrefetchScalarGridSpec(
            num_scalar_prefetch=0,
            grid=(N // bN, HW // thw),
            in_specs=[
                pl.BlockSpec((bN, Cin, thw), lambda n, j: (n, 0, j)),
                pl.BlockSpec((Cout, Cin), lambda n, j: (0, 0)),
                pl.BlockSpec((Cout, 1), lambda n, j: (0, 0)),
            ],
            out_specs=pl.BlockSpec((bN, Cout, thw), lambda n, j: (n, 0, j)),
        ),
        compiler_params=pltpu.CompilerParams(
            dimension_semantics=("parallel", "parallel"),
            vmem_limit_bytes=vmem_limit),
    )(x, w, bias.reshape(Cout, 1).astype(jnp.float32))


# ----------------------------------------------------------------------------
# Attention kernels
# ----------------------------------------------------------------------------
def _dense_attention_kernel(q_ref, k_ref, v_ref, o_ref):
    # q, k: (G, dkh, HW) bf16 (q pre-scaled); v: (G, dvh, HW) bf16
    # o: (G, dvh, HW) bf16 (lane-dense; HW on the 128-lane axis).
    q = q_ref[...]
    k = k_ref[...]
    v = v_ref[...]
    # logits[g, x, y] = sum_d q[g, d, x] * k[g, d, y]
    logits = jax.lax.dot_general(
        q, k, (((1,), (1,)), ((0,), (0,))), preferred_element_type=jnp.float32)
    m = jnp.max(logits, axis=-1, keepdims=True)
    p = jnp.exp(logits - m)                       # softmax math in f32 (v5e-safe)
    s = jnp.sum(p, axis=-1)                       # (G, HW) row sums, lane-dense
    # pv[g, d, x] = sum_y v[g, d, y] * p[g, x, y]  (normalize AFTER the matmul)
    pv = jax.lax.dot_general(
        v, p.astype(jnp.bfloat16), (((2,), (2,)), ((0,), (0,))),
        preferred_element_type=jnp.float32)
    inv = pl.reciprocal(s, approx=True)           # EUP slot
    o_ref[...] = (pv * inv[:, None, :]).astype(o_ref.dtype)


def _flash_attention_kernel(q_ref, k_ref, v_ref, o_ref, m_scr, l_scr, acc_scr):
    # Key-tiled online softmax.  q: (G, dkh, HW); k/v: (G, d*, tkv); o: (G, HW, dvh).
    kv = pl.program_id(1)

    @pl.when(kv == 0)
    def _():
        m_scr[...] = jnp.full_like(m_scr, -jnp.inf)
        l_scr[...] = jnp.zeros_like(l_scr)
        acc_scr[...] = jnp.zeros_like(acc_scr)

    s = jax.lax.dot_general(
        q_ref[...], k_ref[...], (((1,), (1,)), ((0,), (0,))),
        preferred_element_type=jnp.float32)          # (G, HW, tkv)
    m_prev = m_scr[...]
    m_new = jnp.maximum(m_prev, jnp.max(s, axis=-1, keepdims=True))
    alpha = jnp.exp(m_prev - m_new)
    p = jnp.exp(s - m_new)
    l_scr[...] = alpha * l_scr[...] + jnp.sum(p, axis=-1, keepdims=True)
    # pv[g, x, d] = sum_y p[g, x, y] * v[g, d, y]
    pv = jax.lax.dot_general(
        p.astype(jnp.bfloat16), v_ref[...], (((2,), (2,)), ((0,), (0,))),
        preferred_element_type=jnp.float32)          # (G, HW, dvh)
    acc_scr[...] = alpha * acc_scr[...] + pv
    m_scr[...] = m_new

    @pl.when(kv == pl.num_programs(1) - 1)
    def _():
        inv = pl.reciprocal(l_scr[...], approx=True)
        o_ref[...] = (acc_scr[...] * inv).astype(o_ref.dtype)


def multi_head_attention(flat_q, flat_k, flat_v, *, force_flash=False):
    """flat_q/k: (B*Nh, dkh, HW) bf16 (q pre-scaled); flat_v: (B*Nh, dvh, HW) bf16.
    Returns (B*Nh, HW, dvh) bf16 in PyTorch matmul order."""
    BNh, dkh, HW = flat_q.shape
    _, dvh, _ = flat_v.shape
    vmem_limit, budget = _vmem_limit_and_budget()

    per_g_dense = (10 * HW * HW                       # logits f32 + exp f32 + p bf16
                   + 4 * (2 * dkh + 2 * dvh) * HW     # 2x-buffered q/k/v/out (bf16)
                   + 8 * dvh * HW)                    # f32 pv intermediate + slack
    use_dense = (per_g_dense <= budget) and not force_flash

    if use_dense:
        G = _pick_head_group(BNh, per_g_dense, budget, min_steps=4)
        out_t = pl.pallas_call(
            _dense_attention_kernel,
            out_shape=jax.ShapeDtypeStruct((BNh, dvh, HW), jnp.bfloat16),
            grid_spec=pltpu.PrefetchScalarGridSpec(
                num_scalar_prefetch=0,
                grid=(BNh // G,),
                in_specs=[
                    pl.BlockSpec((G, dkh, HW), lambda i: (i, 0, 0)),
                    pl.BlockSpec((G, dkh, HW), lambda i: (i, 0, 0)),
                    pl.BlockSpec((G, dvh, HW), lambda i: (i, 0, 0)),
                ],
                out_specs=pl.BlockSpec((G, dvh, HW), lambda i: (i, 0, 0)),
            ),
            compiler_params=pltpu.CompilerParams(
                dimension_semantics=("parallel",),
                vmem_limit_bytes=vmem_limit),
        )(flat_q, flat_k, flat_v)
        # Lane-dense kernel output -> PyTorch matmul element ordering.
        return out_t.transpose(0, 2, 1)

    # Flash path: key-tiled online softmax, needed when (HW,HW) logits overflow
    # VMEM (v7x hits this at roughly half the HW of v5e/v6e).
    G, tkv = _pick_flash_tiles(BNh, HW, dkh, dvh, budget, min_steps=2)
    return pl.pallas_call(
        _flash_attention_kernel,
        out_shape=jax.ShapeDtypeStruct((BNh, HW, dvh), jnp.bfloat16),
        grid_spec=pltpu.PrefetchScalarGridSpec(
            num_scalar_prefetch=0,
            grid=(BNh // G, HW // tkv),
            in_specs=[
                pl.BlockSpec((G, dkh, HW), lambda i, j: (i, 0, 0)),   # q resident
                pl.BlockSpec((G, dkh, tkv), lambda i, j: (i, 0, j)),
                pl.BlockSpec((G, dvh, tkv), lambda i, j: (i, 0, j)),
            ],
            out_specs=pl.BlockSpec((G, HW, dvh), lambda i, j: (i, 0, 0)),
            scratch_shapes=[
                pltpu.VMEM((G, HW, 1), jnp.float32),     # running max
                pltpu.VMEM((G, HW, 1), jnp.float32),     # running sum
                pltpu.VMEM((G, HW, dvh), jnp.float32),   # accumulator
            ],
        ),
        compiler_params=pltpu.CompilerParams(
            dimension_semantics=("parallel", "arbitrary"),
            vmem_limit_bytes=vmem_limit),
    )(flat_q, flat_k, flat_v)


# ----------------------------------------------------------------------------
# Glue: transposed im2col (GEMM-ready, spatial axis on lanes)
# ----------------------------------------------------------------------------
def _im2col_t(x, k, stride, padding):
    """NCHW -> (N, Cin*k*k, Ho*Wo); keeps the input dtype (cast x to bf16 first)."""
    N, C, H, W = x.shape
    xp = jnp.pad(x, ((0, 0), (0, 0), (padding, padding), (padding, padding)))
    Ho = (H + 2 * padding - k) // stride + 1
    Wo = (W + 2 * padding - k) // stride + 1
    cols = []
    for di in range(k):
        for dj in range(k):
            cols.append(
                xp[:, :, di : di + (Ho - 1) * stride + 1 : stride,
                          dj : dj + (Wo - 1) * stride + 1 : stride])
    patches = jnp.stack(cols, axis=2)                 # (N, C, k*k, Ho, Wo)
    patches = patches.reshape(N, C * k * k, Ho * Wo)  # K index = cin*k*k + di*k + dj
    return patches, Ho, Wo


# ----------------------------------------------------------------------------
# AugmentedConv forward
# ----------------------------------------------------------------------------
def augmented_conv_forward(x, params, *, kernel_size, dk, dv, Nh, stride=1,
                           force_flash=False):
    padding = (kernel_size - 1) // 2
    N, Cin, _, _ = x.shape
    dkh, dvh = dk // Nh, dv // Nh

    w_conv, b_conv = params["w_conv"], params["b_conv"]
    w_qkv, b_qkv = params["w_qkv"], params["b_qkv"]
    C_conv = w_conv.shape[0]
    C_qkv = 2 * dk + dv
    K = Cin * kernel_size * kernel_size

    # Fold the q scale (dkh^-0.5) into the q slice of the qkv conv weights/bias.
    scale = float(dkh) ** -0.5
    w_qkv = jnp.concatenate([w_qkv[:dk] * scale, w_qkv[dk:]], axis=0)
    b_qkv = jnp.concatenate([b_qkv[:dk] * scale, b_qkv[dk:]], axis=0)

    # bf16 at the source: cast x once so the 9x im2col tensor is bf16 in HBM.
    patches, Ho, Wo = _im2col_t(x.astype(jnp.bfloat16), kernel_size, stride, padding)
    HW = Ho * Wo

    # Fused conv_out + qkv GEMM over one shared im2col read; qkv emitted as bf16.
    conv_out, qkv = fused_conv_gemm(
        patches,
        w_conv.reshape(C_conv, K).astype(jnp.bfloat16),
        w_qkv.reshape(C_qkv, K).astype(jnp.bfloat16),
        b_conv, b_qkv)
    conv_out = conv_out.reshape(N, C_conv, Ho, Wo)

    flat_q = qkv[:, :dk].reshape(N * Nh, dkh, HW)
    flat_k = qkv[:, dk:2 * dk].reshape(N * Nh, dkh, HW)
    flat_v = qkv[:, 2 * dk:].reshape(N * Nh, dvh, HW)

    # (N*Nh, HW, dvh) bf16, already in PyTorch's matmul element ordering.
    attn_pt = multi_head_attention(flat_q, flat_k, flat_v, force_flash=force_flash)

    # PyTorch: RAW reshape (N, Nh, HW, dvh) -> (N, Nh, dvh, H, W), then combine
    # heads.  Replicate that exact reinterpretation.
    combined = (attn_pt.reshape(N, Nh, HW, dvh)
                       .reshape(N, Nh, dvh, HW)          # raw reshape, as in PyTorch
                       .reshape(N, Nh * dvh, HW))

    # 1x1 attn_out conv == plain GEMM on (dv, HW); no im2col needed.
    attn_out = gemm_bias(
        combined,
        params["w_attn"].reshape(dv, dv).astype(jnp.bfloat16),
        params["b_attn"])
    attn_out = attn_out.reshape(N, dv, Ho, Wo)

    return jnp.concatenate([conv_out, attn_out], axis=1)


# ----------------------------------------------------------------------------
# Pure-JAX reference (for correctness check only)
# ----------------------------------------------------------------------------
def reference_forward(x, params, *, kernel_size, dk, dv, Nh, stride=1):
    padding = (kernel_size - 1) // 2

    def conv(xx, w, b, s, p):
        y = jax.lax.conv_general_dilated(
            xx, w, (s, s), [(p, p), (p, p)],
            dimension_numbers=("NCHW", "OIHW", "NCHW"),
        )
        return y + b.reshape(1, -1, 1, 1)

    conv_out = conv(x, params["w_conv"], params["b_conv"], stride, padding)
    qkv = conv(x, params["w_qkv"], params["b_qkv"], stride, padding)
    N, _, H, W = conv_out.shape
    q, k, v = qkv[:, :dk], qkv[:, dk : 2 * dk], qkv[:, 2 * dk :]
    dkh, dvh = dk // Nh, dv // Nh
    q = q.reshape(N, Nh, dkh, H * W) * float(dkh) ** -0.5
    k = k.reshape(N, Nh, dkh, H * W)
    v = v.reshape(N, Nh, dvh, H * W)
    logits = jnp.einsum("bhdq,bhdk->bhqk", q, k)
    weights = jax.nn.softmax(logits, axis=-1)
    attn = jnp.einsum("bhqk,bhdk->bhqd", weights, v)
    attn = attn.reshape(N, Nh, dvh, H, W).reshape(N, Nh * dvh, H, W)  # raw reshape
    attn = conv(attn, params["w_attn"], params["b_attn"], 1, 0)
    return jnp.concatenate([conv_out, attn], axis=1)


# ----------------------------------------------------------------------------
# Main
# ----------------------------------------------------------------------------
if __name__ == "__main__":
    in_channels, out_channels, kernel_size = 4, 8, 3
    dk, dv, Nh, stride = 8, 4, 2, 1
    N, H, W = 2, 16, 16

    key = jax.random.PRNGKey(0)
    ks = jax.random.split(key, 7)
    x = jax.random.normal(ks[0], (N, in_channels, H, W), dtype=jnp.float32)

    params = {
        "w_conv": 0.1 * jax.random.normal(
            ks[1], (out_channels - dv, in_channels, kernel_size, kernel_size), jnp.float32),
        "b_conv": 0.05 * jax.random.normal(ks[2], (out_channels - dv,), jnp.float32),
        "w_qkv": 0.1 * jax.random.normal(
            ks[3], (2 * dk + dv, in_channels, kernel_size, kernel_size), jnp.float32),
        "b_qkv": 0.05 * jax.random.normal(ks[4], (2 * dk + dv,), jnp.float32),
        "w_attn": 0.1 * jax.random.normal(ks[5], (dv, dv, 1, 1), jnp.float32),
        "b_attn": 0.05 * jax.random.normal(ks[6], (dv,), jnp.float32),
    }

    ref = reference_forward(
        x, params, kernel_size=kernel_size, dk=dk, dv=dv, Nh=Nh, stride=stride)
    ref = jax.block_until_ready(ref)

    # Default (dense-softmax) attention path.
    out = augmented_conv_forward(
        x, params, kernel_size=kernel_size, dk=dk, dv=dv, Nh=Nh, stride=stride)
    out = jax.block_until_ready(out)
    assert out.shape == (N, out_channels, H, W), out.shape
    assert jnp.allclose(out, ref, rtol=2e-2, atol=2e-2), (
        float(jnp.max(jnp.abs(out - ref))))

    # Exercise the key-tiled online-softmax (flash) fallback path as well.
    out_flash = augmented_conv_forward(
        x, params, kernel_size=kernel_size, dk=dk, dv=dv, Nh=Nh, stride=stride,
        force_flash=True)
    out_flash = jax.block_until_ready(out_flash)
    assert jnp.allclose(out_flash, ref, rtol=2e-2, atol=2e-2), (
        float(jnp.max(jnp.abs(out_flash - ref))))

    print("KERNEL_OK")
</pallas_src>

<mosaic_0001>
module attributes {stable_mosaic.version = 11 : i64} {
  func.func @kernel(%arg0: i32, %arg1: i32, %arg2: memref<2x36x128xbf16, #tpu.memory_space<vmem>>, %arg3: memref<4x36xbf16, #tpu.memory_space<vmem>>, %arg4: memref<20x36xbf16, #tpu.memory_space<vmem>>, %arg5: memref<4x1xf32, #tpu.memory_space<vmem>>, %arg6: memref<20x1xf32, #tpu.memory_space<vmem>>, %arg7: memref<2x4x128xf32, #tpu.memory_space<vmem>>, %arg8: memref<2x20x128xbf16, #tpu.memory_space<vmem>>) attributes {dimension_semantics = [#tpu.dimension_semantics<parallel>, #tpu.dimension_semantics<parallel>], iteration_bounds = array<i64: 1, 2>, scalar_prefetch = 0 : i64, scratch_operands = 0 : i64, tpu.core_type = #tpu.core_type<tc>, window_params = [{transform_indices = @transform_0, window_bounds = array<i64: 2, 36, 128>}, {pipeline_mode = #tpu.pipeline_mode<synchronous>, transform_indices = @transform_1, window_bounds = array<i64: 4, 36>}, {pipeline_mode = #tpu.pipeline_mode<synchronous>, transform_indices = @transform_2, window_bounds = array<i64: 20, 36>}, {pipeline_mode = #tpu.pipeline_mode<synchronous>, transform_indices = @transform_3, window_bounds = array<i64: 4, 1>}, {pipeline_mode = #tpu.pipeline_mode<synchronous>, transform_indices = @transform_4, window_bounds = array<i64: 20, 1>}, {transform_indices = @transform_5, window_bounds = array<i64: 2, 4, 128>}, {transform_indices = @transform_6, window_bounds = array<i64: 2, 20, 128>}]} {
    %c0 = arith.constant 0 : index
    %c0_0 = arith.constant 0 : index
    %c0_1 = arith.constant 0 : index
    %0 = vector.load %arg2[%c0, %c0_0, %c0_1] : memref<2x36x128xbf16, #tpu.memory_space<vmem>>, vector<1x36x128xbf16>
    %1 = vector.shape_cast %0 : vector<1x36x128xbf16> to vector<36x128xbf16>
    %c0_2 = arith.constant 0 : index
    %c0_3 = arith.constant 0 : index
    %2 = vector.load %arg3[%c0_2, %c0_3] : memref<4x36xbf16, #tpu.memory_space<vmem>>, vector<4x36xbf16>
    %cst = arith.constant dense<0.000000e+00> : vector<4x128xf32>
    %3 = tpu.matmul %2, %1, %cst {dimension_numbers = #tpu.dot_dimension_numbers<[1], [0], [0], [1], [0, 0, 1, 1], [], []>} : vector<4x36xbf16>, vector<36x128xbf16>, vector<4x128xf32> -> vector<4x128xf32>
    %c0_4 = arith.constant 0 : index
    %c0_5 = arith.constant 0 : index
    %4 = vector.load %arg5[%c0_4, %c0_5] : memref<4x1xf32, #tpu.memory_space<vmem>>, vector<4x1xf32>
    %5 = vector.broadcast %4 : vector<4x1xf32> to vector<4x128xf32>
    %6 = arith.addf %3, %5 : vector<4x128xf32>
    %c0_6 = arith.constant 0 : index
    %c0_7 = arith.constant 0 : index
    %c0_8 = arith.constant 0 : index
    %7 = vector.load %arg7[%c0_6, %c0_7, %c0_8] : memref<2x4x128xf32, #tpu.memory_space<vmem>>, vector<1x4x128xf32>
    %8 = vector.shape_cast %7 : vector<1x4x128xf32> to vector<4x128xf32>
    %9 = vector.shape_cast %6 : vector<4x128xf32> to vector<1x4x128xf32>
    tpu.vector_store %arg7[%c0_6, %c0_7, %c0_8], %9 {strides = array<i32>} : memref<2x4x128xf32, #tpu.memory_space<vmem>>, vector<1x4x128xf32>,
    %c0_9 = arith.constant 0 : index
    %c0_10 = arith.constant 0 : index
    %10 = vector.load %arg4[%c0_9, %c0_10] : memref<20x36xbf16, #tpu.memory_space<vmem>>, vector<20x36xbf16>
    %cst_11 = arith.constant dense<0.000000e+00> : vector<20x128xf32>
    %11 = tpu.matmul %10, %1, %cst_11 {dimension_numbers = #tpu.dot_dimension_numbers<[1], [0], [0], [1], [0, 0, 1, 1], [], []>} : vector<20x36xbf16>, vector<36x128xbf16>, vector<20x128xf32> -> vector<20x128xf32>
    %c0_12 = arith.constant 0 : index
    %c0_13 = arith.constant 0 : index
    %12 = vector.load %arg6[%c0_12, %c0_13] : memref<20x1xf32, #tpu.memory_space<vmem>>, vector<20x1xf32>
    %13 = vector.broadcast %12 : vector<20x1xf32> to vector<20x128xf32>
    %14 = arith.addf %11, %13 : vector<20x128xf32>
    %15 = arith.truncf %14 : vector<20x128xf32> to vector<20x128xbf16>
    %c0_14 = arith.constant 0 : index
    %c0_15 = arith.constant 0 : index
    %c0_16 = arith.constant 0 : index
    %16 = vector.load %arg8[%c0_14, %c0_15, %c0_16] : memref<2x20x128xbf16, #tpu.memory_space<vmem>>, vector<1x20x128xbf16>
    %17 = vector.shape_cast %16 : vector<1x20x128xbf16> to vector<20x128xbf16>
    %18 = vector.shape_cast %15 : vector<20x128xbf16> to vector<1x20x128xbf16>
    tpu.vector_store %arg8[%c0_14, %c0_15, %c0_16], %18 {strides = array<i32>} : memref<2x20x128xbf16, #tpu.memory_space<vmem>>, vector<1x20x128xbf16>,
    %c1 = arith.constant 1 : index
    %c0_17 = arith.constant 0 : index
    %c0_18 = arith.constant 0 : index
    %19 = vector.load %arg2[%c1, %c0_17, %c0_18] : memref<2x36x128xbf16, #tpu.memory_space<vmem>>, vector<1x36x128xbf16>
    %20 = vector.shape_cast %19 : vector<1x36x128xbf16> to vector<36x128xbf16>
    %c0_19 = arith.constant 0 : index
    %c0_20 = arith.constant 0 : index
    %21 = vector.load %arg3[%c0_19, %c0_20] : memref<4x36xbf16, #tpu.memory_space<vmem>>, vector<4x36xbf16>
    %cst_21 = arith.constant dense<0.000000e+00> : vector<4x128xf32>
    %22 = tpu.matmul %21, %20, %cst_21 {dimension_numbers = #tpu.dot_dimension_numbers<[1], [0], [0], [1], [0, 0, 1, 1], [], []>} : vector<4x36xbf16>, vector<36x128xbf16>, vector<4x128xf32> -> vector<4x128xf32>
    %c0_22 = arith.constant 0 : index
    %c0_23 = arith.constant 0 : index
    %23 = vector.load %arg5[%c0_22, %c0_23] : memref<4x1xf32, #tpu.memory_space<vmem>>, vector<4x1xf32>
    %24 = vector.broadcast %23 : vector<4x1xf32> to vector<4x128xf32>
    %25 = arith.addf %22, %24 : vector<4x128xf32>
    %c1_24 = arith.constant 1 : index
    %c0_25 = arith.constant 0 : index
    %c0_26 = arith.constant 0 : index
    %26 = vector.load %arg7[%c1_24, %c0_25, %c0_26] : memref<2x4x128xf32, #tpu.memory_space<vmem>>, vector<1x4x128xf32>
    %27 = vector.shape_cast %26 : vector<1x4x128xf32> to vector<4x128xf32>
    %28 = vector.shape_cast %25 : vector<4x128xf32> to vector<1x4x128xf32>
    tpu.vector_store %arg7[%c1_24, %c0_25, %c0_26], %28 {strides = array<i32>} : memref<2x4x128xf32, #tpu.memory_space<vmem>>, vector<1x4x128xf32>,
    %c0_27 = arith.constant 0 : index
    %c0_28 = arith.constant 0 : index
    %29 = vector.load %arg4[%c0_27, %c0_28] : memref<20x36xbf16, #tpu.memory_space<vmem>>, vector<20x36xbf16>
    %cst_29 = arith.constant dense<0.000000e+00> : vector<20x128xf32>
    %30 = tpu.matmul %29, %20, %cst_29 {dimension_numbers = #tpu.dot_dimension_numbers<[1], [0], [0], [1], [0, 0, 1, 1], [], []>} : vector<20x36xbf16>, vector<36x128xbf16>, vector<20x128xf32> -> vector<20x128xf32>
    %c0_30 = arith.constant 0 : index
    %c0_31 = arith.constant 0 : index
    %31 = vector.load %arg6[%c0_30, %c0_31] : memref<20x1xf32, #tpu.memory_space<vmem>>, vector<20x1xf32>
    %32 = vector.broadcast %31 : vector<20x1xf32> to vector<20x128xf32>
    %33 = arith.addf %30, %32 : vector<20x128xf32>
    %34 = arith.truncf %33 : vector<20x128xf32> to vector<20x128xbf16>
    %c1_32 = arith.constant 1 : index
    %c0_33 = arith.constant 0 : index
    %c0_34 = arith.constant 0 : index
    %35 = vector.load %arg8[%c1_32, %c0_33, %c0_34] : memref<2x20x128xbf16, #tpu.memory_space<vmem>>, vector<1x20x128xbf16>
    %36 = vector.shape_cast %35 : vector<1x20x128xbf16> to vector<20x128xbf16>
    %37 = vector.shape_cast %34 : vector<20x128xbf16> to vector<1x20x128xbf16>
    tpu.vector_store %arg8[%c1_32, %c0_33, %c0_34], %37 {strides = array<i32>} : memref<2x20x128xbf16, #tpu.memory_space<vmem>>, vector<1x20x128xbf16>,
    return
  }
  func.func @transform_0(%arg0: i32, %arg1: i32) -> (i32, i32, i32) {
    %c0_i32 = arith.constant 0 : i32
    %c0_i32_0 = arith.constant 0 : i32
    return %arg0, %c0_i32, %arg1 : i32, i32, i32
  }
  func.func @transform_1(%arg0: i32, %arg1: i32) -> (i32, i32) {
    %c0_i32 = arith.constant 0 : i32
    %c0_i32_0 = arith.constant 0 : i32
    %c0_i32_1 = arith.constant 0 : i32
    return %c0_i32, %c0_i32_0 : i32, i32
  }
  func.func @transform_2(%arg0: i32, %arg1: i32) -> (i32, i32) {
    %c0_i32 = arith.constant 0 : i32
    %c0_i32_0 = arith.constant 0 : i32
    %c0_i32_1 = arith.constant 0 : i32
    return %c0_i32, %c0_i32_0 : i32, i32
  }
  func.func @transform_3(%arg0: i32, %arg1: i32) -> (i32, i32) {
    %c0_i32 = arith.constant 0 : i32
    %c0_i32_0 = arith.constant 0 : i32
    %c0_i32_1 = arith.constant 0 : i32
    return %c0_i32, %c0_i32_0 : i32, i32
  }
  func.func @transform_4(%arg0: i32, %arg1: i32) -> (i32, i32) {
    %c0_i32 = arith.constant 0 : i32
    %c0_i32_0 = arith.constant 0 : i32
    %c0_i32_1 = arith.constant 0 : i32
    return %c0_i32, %c0_i32_0 : i32, i32
  }
  func.func @transform_5(%arg0: i32, %arg1: i32) -> (i32, i32, i32) {
    %c0_i32 = arith.constant 0 : i32
    %c0_i32_0 = arith.constant 0 : i32
    return %arg0, %c0_i32, %arg1 : i32, i32, i32
  }
  func.func @transform_6(%arg0: i32, %arg1: i32) -> (i32, i32, i32) {
    %c0_i32 = arith.constant 0 : i32
    %c0_i32_0 = arith.constant 0 : i32
    return %arg0, %c0_i32, %arg1 : i32, i32, i32
  }
}

</mosaic_0001>

<bundles_post_ra>
// kernel: tpu_custom_call.1
= control target key start
LH: loop header
LB: loop body
LE: loop exit
PB: predicated region body
PF: predicated region fallthrough
CT: control target
= control target key end

     0   :  { %12 = vsyncpa [#allocation4], 0  ;;  %s1423_s0 = inlined_call_operand.vmem [shape: bf16[2,36,256], index: 0, kind: input, shape index: {}]   ;;  %s1424_s1 = inlined_call_operand.vmem [shape: bf16[4,36], index: 1, kind: input, shape index: {}]   ;;  %s1425_s2 = inlined_call_operand.vmem [shape: bf16[20,36], index: 2, kind: input, shape index: {}]   ;;  %s1426_s3 = inlined_call_operand.vmem [shape: f32[4,1], index: 3, kind: input, shape index: {}]   ;;  %s1427_s4 = inlined_call_operand.vmem [shape: f32[20,1], index: 4, kind: input, shape index: {}]   ;;  %s1428_s5 = inlined_call_operand.hbm [shape: f32[2,4,256], index: 5, kind: output, shape index: {0}]   ;;  %s1429_s6 = inlined_call_operand.vmem [shape: bf16[2,20,256], index: 6, kind: output, shape index: {1}]  }
   0x1   :  { %14 = vsyncpa [#allocation4 + $0x1], 0  ;;  %s1221_s21 = smov 0   ;;  %s1223_s22 = smov 0  }
   0x2   :  { %s1225_s23 = smov 0   ;;  %s1227_s24 = smov 0  }
   0x3   :  { %s1229_s25 = smov 0   ;;  %s1231_s26 = smov 0  }
   0x4 LB: > { %s911_s27 = sadd.s32 4294967295, %s1177_s26   ;;  %s912_s28 = sadd.s32 4294967294, %s1177_s26   ;;  %s1177_s26 = sphi %s1231_s26, %s20_s26   ;;  %s1173_s25 = sphi %s1229_s25, %s1436_s25   ;;  %s1169_s24 = sphi %s1227_s24, %s1435_s24   ;;  %s1165_s23 = sphi %s1225_s23, %s1434_s23   ;;  %s1161_s22 = sphi %s1223_s22, %s1433_s22   ;;  %s1157_s21 = sphi %s1221_s21, %s1432_s21  }
   0x5   : > { %s29_s29 = sadd.s32 1, %s1173_s25  ;;  %s41_s30 = sadd.s32 1, %s1165_s23 }
   0x6   : > { %p30_p0 = scmp.ge.s32.totalorder %s29_s29, 2  ;;  %p48_p1 = scmp.ne.s32.totalorder %s1165_s23, %s1161_s22 }
   0x7   : > { %p49_p2 = scmp.eq.s32.totalorder %s1177_s26, 0  ;;  %p164_p3 = scmp.eq.s32.totalorder %s911_s27, 1 }
   0x8   : > { %s1438_s29 = smov (%p30_p0, %s29_s29), 0  ;;  %p169_p6 = scmp.ne.s32.totalorder %s1161_s22, %s1157_s21 }
   0x9   : > { %p50_p4 = por %p49_p2, %p48_p1  ;;  %p1260_p5 = por %p164_p3, %p48_p1 }
   0xa   : > { %s37_s8 = ssub.s32 %s1173_s25, %s1438_s29  ;;  %p170_p8 = scmp.eq.s32.totalorder %s912_s28, 1 }
   0xb   : > { %p39_p7 = scmp.eq.s32.totalorder %s37_s8, 0  ;;  %p914_p10 = scmp.ge.s32.totalorder %s1177_s26, 2 }
   0xc   : > { %p1271_p9 = por %p170_p8, %p169_p6 }
   0xd   : > { %s1269_s9 = scalar_select %p39_p7, %s1165_s23, %s41_s30  }
   0xe   : > { %226 = sbr.rel (%p914_p10) target bundleno = 30 (0x1e), region = 32 }
  0x13   : > { %229 = sbr.rel (!%p50_p4) target bundleno = 30 (0x1e), region = 36  ;;  %s231_s11 = sand.u32 (%p50_p4), 1, %s1165_s23  }
  0x14   : > { %s915_s12 = sshll.u32 (%p50_p4), %s1173_s25, 2  ;;  %s1025_s13 = smul.u32 (%p50_p4), 40, %s231_s11 }
  0x15   : > { %s238_s16 = scalar_lea.vmem (%p50_p4), %s1423_s0, %s915_s12 }
  0x16   : > { %v255_v0 = vld [vmem:[%s238_s16] sm:$0xf] (%p50_p4)  ;;  %v257_v1 = vld [vmem:[%s238_s16 + $0x8] sm:$0xf] (%p50_p4)  ;;  %v259_v2 = vld [vmem:[%s238_s16 + $0x10] sm:$0xf] (%p50_p4) }
  0x17   : > { %v261_v3 = vld [vmem:[%s238_s16 + $0x18] sm:$0xf] (%p50_p4)  ;;  %v263_v4 = vld [vmem:[%s238_s16 + $0x20] sm:$0xf] (%p50_p4)  ;;  %s233_s17 = scalar_lea.vmem (%p50_p4), [#allocation2], %s1025_s13 }
  0x18   : > { %256 = vst [vmem:[%s233_s17] sm:$0xf] %v255_v0  ;;  %258 = vst [vmem:[%s233_s17 + $0x4] sm:$0xf] %v257_v1  ;;  %v265_v5 = vld [vmem:[%s238_s16 + $0x28] sm:$0xf] }
  0x19   : > { %260 = vst [vmem:[%s233_s17 + $0x8] sm:$0xf] %v259_v2  ;;  %262 = vst [vmem:[%s233_s17 + $0xc] sm:$0xf] %v261_v3  ;;  %v267_v6 = vld [vmem:[%s238_s16 + $0x30] sm:$0xf] }
  0x1a   : > { %264 = vst [vmem:[%s233_s17 + $0x10] sm:$0xf] %v263_v4  ;;  %v269_v7 = vld [vmem:[%s238_s16 + $0x38] sm:$0xf]  ;;  %266 = vst [vmem:[%s233_s17 + $0x14] sm:$0xf] %v265_v5 }
  0x1b   : > { %268 = vst [vmem:[%s233_s17 + $0x18] sm:$0xf] %v267_v6  ;;  %270 = vst [vmem:[%s233_s17 + $0x1c] sm:$0xf] %v269_v7  ;;  %v271_v8 = vld [vmem:[%s238_s16 + $0x40] sm:$0xf] }
  0x1c   : > { %v273_v9 = vld [vmem:[%s238_s16 + $0x48] sm:$0xf]  ;;  %272 = vst [vmem:[%s233_s17 + $0x20] sm:$0xf] %v271_v8 }
  0x1d   : > { %274 = vst [vmem:[%s233_s17 + $0x24] sm:$0xf] %v273_v9 }
  0x1e PF: > { %p916_p11 = scmp.ge.s32.totalorder %s1177_s26, 1  ;;  %p317_p12 = scmp.lt.s32.totalorder %s1177_s26, 3 }
  0x20   : > { %p318_p13 = pnand %p916_p11, %p317_p12 }
  0x21   : > { %s1286_s18 = sand.u32 (!%p318_p13), 1, %s1161_s22   ;;  %s950_s11 = sshll.u32 (!%p318_p13), %s1169_s24, 6 }
  0x22   : > { %321 = sbr.rel (%p318_p13) target bundleno = 287 (0x11f), region = 77  ;;  %s917_s19 = sshll.u32 (!%p318_p13), %s1286_s18, 3 }
  0x23   : > { %s1026_s27 = smul.u32 (!%p318_p13), 40, %s1286_s18  ;;  %s1359_s13 = scalar_lea.hbm (!%p318_p13), %s1428_s5, %s950_s11 }
  0x24   : > { %s1027_s20 = smul.u32 (!%p318_p13), 24, %s1286_s18  ;;  %s713_s14 = scalar_lea.sflag (!%p318_p13), [#allocation4], %s1286_s18 }
  0x25   : > { %s1294_s28 = scalar_lea.vmem (!%p318_p13), [#allocation2], %s1026_s27  ;;  %s350_s27 = scalar_lea.vmem (!%p318_p13), [#allocation3], %s917_s19 }
  0x26   : > { %s1349_s30 = scalar_lea.vmem (!%p318_p13), [#allocation5], %s1027_s20  ;;  %s732_s8 = sshll.u32 (!%p318_p13), %s350_s27, 4  ;;  %s1353_s8 = int_to_ptr.vmem [resolvable:$true] %s732_s8 }
  0x27   : > { %vm388_vm0 = vcmask 293888   ;;  %v1094_v10 = vld [vmem:[%s1425_s2] sm:$0xff]   ;;  %v1179_v11 = vmov 0.0   ;;  %vm1180_vm1 = vmmov 0   ;;  %vm392_vm2 = vcmask 1041408   ;;  %v1092_v13 = vld [vmem:[%s1294_s28 + $0x8] sm:$0xff]  }
  0x28   : > { %983 = vmatprep.subr.bf16.mxu0 %v1179_v11  ;;  %989 = vmatprep.mubr.msk.bf16.mxu0 %vm1180_vm1, %v1179_v11  ;;  %v1091_v12 = vld [vmem:[%s1294_s28 + $0x10] ss:$0 sps:$4 sm:$0x33]   ;;  %v1093_v15 = vld [vmem:[%s1294_s28] sm:$0xff]   ;;  %v1181_v19 = vmov 0   ;;  %v1098_v26 = vld [vmem:[%s1294_s28 + $0x14] sm:$0xff]  }
  0x29   : > { %999 = vmatprep.mubr.msk.bf16.mxu1 %vm388_vm0, %v1094_v10  ;;  %1023 = vmatprep.subr.msk.bf16.mxu1 %vm392_vm2, %v1091_v12  ;;  %v394_v14 = vsel %vm392_vm2, %v1091_v12, 0  ;;  %v440_v16 = vld [vmem:[%s1427_s4] sm:$0xff]  ;;  %v442_v17 = vld [vmem:[%s1427_s4 + $0x10] sm:$0xf]  ;;  %v441_v25 = vld [vmem:[%s1427_s4 + $0x8] sm:$0xff]  ;;  %s1101_s15 = scalar_lea.vmem %s1353_s8, 128 }
  0x2a   : > { %984 = vmatpush3.bf16.msra.mxu0 %v394_v14  ;;  %994 = vmatpush3.bf16.msra.mxu1 %v394_v14  ;;  %v1096_v18 = vld [vmem:[%s1294_s28 + $0x24] ss:$0 sps:$4 sm:$0x33]   ;;  %v1095_v20 = vld [vmem:[%s1425_s2 + $0x8] ss:$0 sps:$4 sm:$0x33]   ;;  %p1102_p0 = scmp.ne.s32.totalorder %s1353_s8, %s1101_s15 }
  0x2b   : > { %985 = vmatprep.subr.bf16.mxu0 %v1179_v11  ;;  %995 = vmatprep.subr.bf16.mxu1 %v1092_v13  ;;  %v366_v21 = vld [vmem:[%s1424_s1] sm:$0x3]  ;;  %v568_v22 = vsel %vm392_vm2, %v1096_v18, 0  ;;  %v617_v27 = vld [vmem:[%s1427_s4 + $0x10] sm:$0xf]  ;;  %s1182_s16 = smov [#allocation3]  }
  0x2c   : > { %1089 = vset.pattern.permute.xlu0 %v1181_v19  ;;  %1090 = vset.pattern.permute.xlu1 %v1181_v19  ;;  %v1097_v23 = vld [vmem:[%s1294_s28 + $0x1c] sm:$0xff]   ;;  %p1103_p1 = pnand %p1102_p0, %p1260_p5  ;;  %s1105_s17 = sshll.u32 %s1182_s16, 4  ;;  %s1106_s17 = int_to_ptr.vmem [resolvable:$false] %s1105_s17 }
  0x2d   : > { %445 = vperm.xlu0 %1089, %v440_v16   ;;  %455 = vperm.xlu1 %1090, %v442_v17   ;;  %v1099_v24 = vld [vmem:[%s1425_s2] sm:$0xff]   ;;  %v1100_v28 = vld [vmem:[%s1425_s2 + $0x8] ss:$0 sps:$4 sm:$0x33]   ;;  %s1107_s19 = scalar_lea.vmem %s1106_s17, 256  ;;  %p1108_p3 = scmp.lt.s32.totalorder %s1353_s8, %s1106_s17 }
  0x2e   : > { %986 = vmatpush3.bf16.msra.mxu0 %v1092_v13  ;;  %996 = vmatpush3.bf16.msra.mxu1 %v1092_v13  ;;  %v542_v29 = vld [vmem:[%s1424_s1] sm:$0x3]  ;;  %p1104_p2 = pneg %p1103_p1  ;;  %p1109_p4 = scmp.lt.s32.totalorder %s1107_s19, %s1101_s15 }
  0x2f   : > { %987 = vmatprep.subr.bf16.mxu0 %v1179_v11  ;;  %997 = vmatprep.subr.bf16.mxu1 %v1093_v15  ;;  %v367_v30 = vld [vmem:[%s1426_s3] sm:$0xf] }
  0x30   : > { %v543_v31 = vld [vmem:[%s1426_s3] sm:$0xf]  ;;  %p1110_p6 = por %p1109_p4, %p1108_p3 }
  0x31   : > { %450 = vperm.xlu0 %1089, %v441_v25   ;;  %620 = vperm.xlu1 %1090, %v440_v16  }
  0x32   : > { %988 = vmatpush3.bf16.msra.mxu0 %v1093_v15  ;;  %998 = vmatpush3.bf16.msra.mxu1 %v1093_v15  ;;  %p1111_p7 = pnand %p1110_p6, %p1104_p2 }
  0x33   : > { %1003 = vmatprep.subr.bf16.mxu0 %v1179_v11  ;;  %1024 = vmatprep.subr.msk.bf16.mxu1 %vm392_vm2, %v1096_v18 }
  0x35   : > { %990 = vmatmul.mubr.msk.bf16.vlgmr.msra.gmra.mxu0 %vm388_vm0, %v366_v21  ;;  %1000 = vmatmul.mubr.msk.bf16.vlgmr.msra.gmra.mxu1 %vm388_vm0, %v1095_v20 }
  0x36   : > { %1004 = vmatpush3.bf16.msra.mxu0 %v568_v22  ;;  %1014 = vmatpush3.bf16.msra.mxu1 %v568_v22 }
  0x37   : > { %1005 = vmatprep.subr.bf16.mxu0 %v1179_v11  ;;  %1015 = vmatprep.subr.bf16.mxu1 %v1097_v23 }
  0x38   : > { %1009 = vmatprep.mubr.msk.bf16.mxu0 %vm1180_vm1, %v1179_v11  ;;  %1019 = vmatprep.mubr.msk.bf16.mxu1 %vm388_vm0, %v1099_v24 }
  0x39   : > { %625 = vperm.xlu0 %1089, %v441_v25   ;;  %630 = vperm.xlu1 %1090, %v617_v27  }
  0x3a   : > { %1006 = vmatpush3.bf16.msra.mxu0 %v1097_v23  ;;  %1016 = vmatpush3.bf16.msra.mxu1 %v1097_v23 }
  0x3b   : > { %1007 = vmatprep.subr.bf16.mxu0 %v1179_v11  ;;  %1017 = vmatprep.subr.bf16.mxu1 %v1098_v26 }
  0x3d   : > { %370 = vperm.xlu0 %1089, %v367_v30   ;;  %546 = vperm.xlu1 %1090, %v543_v31  }
  0x3e   : > { %1008 = vmatpush3.bf16.msra.mxu0 %v1098_v26  ;;  %1018 = vmatpush3.bf16.msra.mxu1 %v1098_v26 }
  0x41   : > { %1010 = vmatmul.mubr.msk.bf16.vlgmr.msra.gmra.mxu0 %vm388_vm0, %v542_v29  ;;  %1020 = vmatmul.mubr.msk.bf16.vlgmr.msra.gmra.mxu1 %vm388_vm0, %v1100_v28 }
  0xa8   : > { %v446_v32 = vpop.permute.xlu0 %445  ;;  %v456_v35 = vpop.permute.xlu1 %455 }
  0xac   : > { %v451_v33 = vpop.permute.xlu0 %450  ;;  %v621_v37 = vpop.permute.xlu1 %620 }
  0xb4   : > { %v1345_v34 = vpop.permute.xlu0 %625  ;;  %v631_v47 = vpop.permute.xlu1 %630 }
  0xb8   : > { %v371_v36 = vpop.permute.xlu0 %370  ;;  %v547_v53 = vpop.permute.xlu1 %546 }
  0xf5   : > { %v430_v38 = vpop.f32.mrf.mxu0  ;;  %v1001_v39 = vpop.f32.mrf.mxu1 }
  0xf6   : > { %v515_v40 = vadd.f32 %v1001_v39, %v456_v35  ;;  %v431_v41 = vadd.f32 %v430_v38, %v371_v36 }
  0xf7   : > { %v991_v42 = vpop.f32.mrf.mxu0  ;;  %v506_v43 = vpop.f32.mrf.mxu1 }
  0xf8   : > { %v956_v44 = vpack.c.bf16 %v515_v40, %v515_v40  ;;  %436 = vst [vmem:[%s350_s27] sm:$0xf] %v431_v41  ;;  %v507_v50 = vadd.f32 %v506_v43, %v446_v32 }
  0xf9   : > { %v433_v45 = vpop.f32.mrf.mxu0  ;;  %v1002_v46 = vpop.f32.mrf.mxu1 }
  0xfa   : > { %535 = vst [vmem:[%s1349_s30 + $0x8] sm:$0x3] %v956_v44 }
  0xfb   : > { %v992_v48 = vpop.f32.mrf.mxu0  ;;  %v509_v49 = vpop.f32.mrf.mxu1 }
  0xfc   : > { %v510_v51 = vadd.f32 %v509_v49, %v451_v33 }
  0xfe   : > { %v963_v52 = vpack.c.bf16 %v510_v51, %v507_v50 }
 0x100   : > { %964 = vst [vmem:[%s1349_s30] sm:$0xff] %v963_v52  }
 0x101   : > { %v604_v54 = vpop.f32.mrf.mxu0  ;;  %v1021_v55 = vpop.f32.mrf.mxu1 }
 0x102   : > { %v605_v56 = vadd.f32 %v604_v54, %v547_v53  ;;  %v690_v57 = vadd.f32 %v1021_v55, %v631_v47 }
 0x103   : > { %v1011_v58 = vpop.f32.mrf.mxu0  ;;  %v681_v59 = vpop.f32.mrf.mxu1 }
 0x104   : > { %938 = vst [vmem:[%s350_s27 + $0x4] sm:$0xf] %v605_v56  ;;  %v959_v60 = vpack.c.bf16 %v690_v57, %v690_v57  ;;  %v682_v61 = vadd.f32 %v681_v59, %v621_v37 }
 0x105   : > { %v607_v62 = vpop.f32.mrf.mxu0  ;;  %v1022_v63 = vpop.f32.mrf.mxu1 }
 0x106   : > { %1114 = shalt.err (!%p1111_p7)
}
 0x107   : > { %s1115_s20 = scalar_lea.hbm %s1359_s13, 128  ;;  %s1119_s12 = scalar_lea.hbm %s1428_s5, 256 }
 0x108   : > { %p1116_p8 = scmp.ne.s32.totalorder %s1359_s13, %s1115_s20  ;;  %p1120_p13 = scmp.lt.s32.totalorder %s1359_s13, %s1428_s5 }
 0x109   : > { %p1121_p0 = scmp.lt.s32.totalorder %s1119_s12, %s1115_s20 }
 0x10a   : > { %p1117_p11 = pnand %p1116_p8, %p1260_p5 }
 0x10b   : > { %p1122_p1 = por %p1121_p0, %p1120_p13 }
 0x10c   : > { %p1118_p12 = pneg %p1117_p11 }
 0x10e   : > { %p1123_p2 = pnand %p1122_p1, %p1118_p12 }
 0x110   : > { %1126 = shalt.err (!%p1123_p2)
}
 0x111   : > { %s1183_s15 = smov 64   ;;  %s1184_s17 = smov 128   ;;  %948 = vst [vmem:[%s1349_s30 + $0x14] sm:$0x3] %v959_v60  ;;  %v957_v0 = vpack.c.bf16 %v682_v61, %v682_v61  ;;  %v1012_v1 = vpop.f32.mrf.mxu0  ;;  %v684_v2 = vpop.f32.mrf.mxu1  ;;  %v763_v5 = vld [vmem:[%s1349_s30] sm:$0xf] (%p1260_p5) }
 0x112   : > { %s1185_s19 = smov 4   ;;  %v685_v3 = vadd.f32 %v684_v2, %v1345_v34  ;;  %741 = sbr.rel (!%p1260_p5) target bundleno = 287 (0x11f), region = 89  ;;  %v765_v6 = vld [vmem:[%s1349_s30 + $0x4] sm:$0xf] (%p1260_p5)  ;;  %v767_v7 = vld [vmem:[%s1349_s30 + $0x8] sm:$0xf] (%p1260_p5) }
 0x113   : > { %1028 = dma.vmem_to_hbm [thread:$0]  (%p1260_p5), %s1353_s8, 128, %s1359_s13, %s713_s14, %s1183_s15, %s1184_s17, %s1185_s19  }
 0x114   : > { %946 = vst [vmem:[%s1349_s30 + $0xc] sm:$0xf] %v957_v0  ;;  %v958_v4 = vpack.c.bf16 %v685_v3, %v685_v3  ;;  %s951_s18 = sshll.u32 (%p1260_p5), %s1169_s24, 2 }
 0x115   : > { %s746_s14 = scalar_lea.vmem (%p1260_p5), %s1429_s6, %s951_s18 }
 0x116   : > { %947 = vst [vmem:[%s1349_s30 + $0x10] sm:$0xf] %v958_v4  ;;  %764 = vst [vmem:[%s746_s14] sm:$0xf] (%p1260_p5), %v763_v5 }
 0x117   : > { %766 = vst [vmem:[%s746_s14 + $0x8] sm:$0xf] %v765_v6  ;;  %768 = vst [vmem:[%s746_s14 + $0x10] sm:$0xf] %v767_v7 }
 0x118   : > { %v773_v10 = vld [vmem:[%s1349_s30 + $0x14] sm:$0xf] }
 0x119   : > { %774 = vst [vmem:[%s746_s14 + $0x28] sm:$0xf] %v773_v10 }
 0x11b   : > { %v769_v8 = vld [vmem:[%s1349_s30 + $0xc] sm:$0xf] }
 0x11c   : > { %770 = vst [vmem:[%s746_s14 + $0x18] sm:$0xf] %v769_v8 }
 0x11d   : > { %v771_v9 = vld [vmem:[%s1349_s30 + $0x10] sm:$0xf] }
 0x11e   : > { %772 = vst [vmem:[%s746_s14 + $0x20] sm:$0xf] %v771_v9 }
 0x11f PF: > { %s816_s24 = sand.u32 1, %s1157_s21   ;;  %p1031_p5 = pnand %p914_p10, %p1271_p9 }
 0x120   : > { %s817_s7 = scalar_lea.sflag [#allocation4], %s816_s24 }
 0x121   : > { %p1032_p3 = pneg %p1031_p5 }
 0x123   : > { %1152 = dma.done.wait (%p1032_p3), %s817_s7, 128  }
 0x124   : > { %1154 = vsyncadd (%p1032_p3), %s817_s7, 4294967168  ;;  %s20_s26 = sadd.s32 1, %s1177_s26   ;;  %s1432_s21 = smov %s1161_s22 }
 0x125   : > { %p17_p4 = scmp.ge.s32.totalorder %s20_s26, 4   ;;  %s1433_s22 = smov %s1165_s23 }
 0x126   : > { %s1434_s23 = smov %s1269_s9  ;;  %s1435_s24 = smov %s1173_s25 }
 0x127   : > { %s1436_s25 = smov %s1438_s29  ;;  %19 = sbr.rel (!%p17_p4) target bundleno = 4 (0x4), region = 177 }
 0x12c   :  { %829 = vsyncpa [#allocation4], 1 }
 0x12d   :  { %831 = vsyncpa [#allocation4 + $0x1], 1 }

</bundles_post_ra>
